<compile_context>
chip_gen: v6e
topology: v6e:2x2x1
jax: 0.10.0
libtpu: 0.0.40
codegen_flags: <defaults>
</compile_context>

<pallas_src>
import functools
import math

import jax
import jax.numpy as jnp
from jax import lax
from jax.experimental import pallas as pl
from jax.experimental.pallas import tpu as pltpu

LN_EPS = 1e-5


def _layernorm(x, gamma=None, beta=None):
    mu = jnp.mean(x, axis=-1, keepdims=True)
    var = jnp.mean((x - mu) ** 2, axis=-1, keepdims=True)
    xn = (x - mu) * lax.rsqrt(var + LN_EPS)
    if gamma is not None:
        xn = xn * gamma + beta
    return xn


def _gelu_exact(x):
    return 0.5 * x * (1.0 + lax.erf(x * 0.7071067811865476))


def transformer_layer_kernel(
    x_ref,                    # (1, N, D)  f32   full sequence, resident across q-tiles
    ln1_g_ref, ln1_b_ref,     # (1, D)     f32   (self.layernorm)
    wqkv_ref,                 # (D, 3D)    bf16  fused [Wq*scale | Wk | Wv]
    wo_ref, bo_ref,           # (D, D) bf16, (1, D) f32
    w1_ref, b1_ref,           # (D, 2D) bf16 (ln2 gamma folded), (1, 2D) f32 (ln2 beta folded)
    w2_ref, b2_ref,           # (2D, D) bf16, (1, D) f32
    y_ref,                    # out block: (1, tq, D)    f32
    attn_ref,                 # out block: (1, H, tq, N) f32
    q_scr, k_scr, v_scr,      # scratch: VMEM (N, D) bf16  full-sequence Q/K/V cache
    *, heads,
):
    f32 = jnp.float32
    bf16 = jnp.bfloat16

    N = x_ref.shape[1]
    D = x_ref.shape[2]
    tq = y_ref.shape[1]
    dk = D // heads

    q_idx = pl.program_id(1)

    # ---- q-step 0 of each batch: LN1 + one fused QKV matmul for the whole sequence ----
    @pl.when(q_idx == 0)
    def _():
        xn = _layernorm(x_ref[0], ln1_g_ref[0], ln1_b_ref[0]).astype(bf16)   # (N, D)
        qkv = jnp.dot(xn, wqkv_ref[...], preferred_element_type=f32)         # (N, 3D)
        q_scr[...] = qkv[:, :D].astype(bf16)        # dk^-0.5 already folded into Wq
        k_scr[...] = qkv[:, D:2 * D].astype(bf16)
        v_scr[...] = qkv[:, 2 * D:].astype(bf16)

    qoff = pl.multiple_of(q_idx * tq, tq)
    x_tile = x_ref[0, pl.ds(qoff, tq), :]                                    # (tq, D) f32

    # ---- per-head attention for this q-tile; Wo row-block folded into the loop ----
    # No explicit kh transpose (dot_general contracts the last dims) and no
    # lane-sparse scratch column stores: each head accumulates straight into acc.
    acc = jnp.zeros((tq, D), f32)
    for h in range(heads):
        sl = slice(h * dk, (h + 1) * dk)
        qh = q_scr[pl.ds(qoff, tq), sl]            # (tq, dk) bf16, pre-scaled
        kh = k_scr[:, sl]                          # (N,  dk) bf16
        vh = v_scr[:, sl]                          # (N,  dk) bf16
        logits = lax.dot_general(qh, kh, (((1,), (1,)), ((), ())),
                                 preferred_element_type=f32)                 # (tq, N)
        m = jnp.max(logits, axis=-1, keepdims=True)
        e = jnp.exp(logits - m)
        p = e / jnp.sum(e, axis=-1, keepdims=True)  # exact softmax (these probs are returned)
        attn_ref[0, h] = p.astype(attn_ref.dtype)
        ctx = jnp.dot(p.astype(bf16), vh, preferred_element_type=f32)        # (tq, dk)
        acc = acc + jnp.dot(ctx.astype(bf16), wo_ref[sl, :],
                            preferred_element_type=f32)                      # (tq, D)

    # ---- output projection bias + residual 1 ----
    x1 = x_tile + acc + bo_ref[0]

    # ---- FFN for this q-tile: LN -> Linear(D,2D) -> GELU -> Linear(2D,D) -> residual ----
    # (ffn LayerNorm gamma/beta were folded into w1/b1 by the wrapper)
    xn2 = _layernorm(x1).astype(bf16)
    h1 = jnp.dot(xn2, w1_ref[...], preferred_element_type=f32) + b1_ref[0]
    h1 = _gelu_exact(h1)
    h2 = jnp.dot(h1.astype(bf16), w2_ref[...], preferred_element_type=f32) + b2_ref[0]
    y_ref[0] = (x1 + h2).astype(y_ref.dtype)


def _pick_tq(n):
    """Largest q-tile that keeps live (tq, N) intermediates bounded."""
    if n <= 256:
        return n
    for t in (256, 128, 64, 32, 16, 8):
        if n % t == 0:
            return t
    return n


def transformer_layer(x, params, heads):
    """x: (B, N, D) float32.  Returns (y: (B,N,D) f32, attn: (B,H,N,N) f32)."""
    B, N, D = x.shape
    assert D % heads == 0
    f32, bf16 = jnp.float32, jnp.bfloat16
    dk = D // heads
    scale = dk ** (-0.5)

    tq = _pick_tq(N)
    n_qt = N // tq

    # Fused QKV weight (one wide matmul) with the attention scale folded into Wq.
    wqkv = jnp.concatenate(
        [params["wq"] * scale, params["wk"], params["wv"]], axis=1).astype(bf16)

    # Fold the ffn LayerNorm affine into the first FFN linear (exact math):
    #   (norm(x)*g + b) @ W1 + b1  ==  norm(x) @ (diag(g) @ W1) + (b @ W1 + b1)
    w1f = (params["ln2_g"].reshape(D, 1) * params["w1"]).astype(bf16)
    b1f = (params["b1"] + params["ln2_b"] @ params["w1"]).astype(f32)

    wo = params["wo"].astype(bf16)
    w2 = params["w2"].astype(bf16)

    def const_spec(shape):
        # Constant across the grid -> single-buffer (no pointless double-buffering).
        return pl.BlockSpec(shape, lambda b, q: (0,) * len(shape),
                            pipeline_mode=pl.Buffered(1))

    in_specs = [
        pl.BlockSpec((1, N, D), lambda b, q: (b, 0, 0)),     # x (resident across q)
        const_spec((1, D)), const_spec((1, D)),              # ln1 gamma/beta
        const_spec((D, 3 * D)),                              # fused Wqkv
        const_spec((D, D)), const_spec((1, D)),              # Wo, bo
        const_spec((D, 2 * D)), const_spec((1, 2 * D)),      # W1 (folded), b1 (folded)
        const_spec((2 * D, D)), const_spec((1, D)),          # W2, b2
    ]
    out_specs = [
        pl.BlockSpec((1, tq, D), lambda b, q: (b, q, 0)),
        pl.BlockSpec((1, heads, tq, N), lambda b, q: (b, 0, q, 0)),
    ]
    out_shape = [
        jax.ShapeDtypeStruct((B, N, D), f32),
        jax.ShapeDtypeStruct((B, heads, N, N), f32),
    ]

    # Advisory cost estimate for XLA's scheduler.
    flops = B * (16 * N * D * D + 4 * N * N * D)
    transcendentals = B * (heads * N * N + 2 * N * D)
    bytes_accessed = 8 * B * N * D + 4 * B * heads * N * N + 16 * D * D

    # VMEM budget: single-buffered bf16 weights + double-buffered x / y / attn
    # blocks + QKV scratch.  Clamped to <= 64 MiB (safe on v7x's 64 MiB physical
    # VMEM); on v5e/v6e (128 MiB) this could be raised to ~96 MiB for large N/D.
    weight_bytes = 2 * (3 * D * D + D * D + 2 * D * D + 2 * D * D) + 4 * 8 * D
    block_bytes = 2 * (4 * N * D + 4 * tq * D + 4 * heads * tq * N)
    scratch_bytes = 3 * 2 * N * D
    est = weight_bytes + block_bytes + scratch_bytes + (2 << 20)
    vmem_limit = int(min(64 * 2 ** 20, max(32 * 2 ** 20, 2 * est)))

    return pl.pallas_call(
        functools.partial(transformer_layer_kernel, heads=heads),
        grid=(B, n_qt),
        in_specs=in_specs,
        out_specs=out_specs,
        out_shape=out_shape,
        scratch_shapes=[pltpu.VMEM((N, D), bf16),
                        pltpu.VMEM((N, D), bf16),
                        pltpu.VMEM((N, D), bf16)],
        compiler_params=pltpu.CompilerParams(
            # q axis carries the per-batch K/V scratch -> "arbitrary";
            # batch axis stays "parallel" for megacore sharding on v7x.
            dimension_semantics=("parallel", "arbitrary"),
            vmem_limit_bytes=vmem_limit,
        ),
        cost_estimate=pl.CostEstimate(
            flops=flops,
            transcendentals=transcendentals,
            bytes_accessed=bytes_accessed),
    )(
        x,
        params["ln1_g"], params["ln1_b"],
        wqkv,
        wo, params["bo"],
        w1f, b1f,
        w2, params["b2"],
    )


# ---------------- parameter init (deterministic, xavier-uniform-like) ----------------
def _xavier_uniform(key, fan_in, fan_out):
    bound = math.sqrt(6.0 / (fan_in + fan_out))
    # Stored in (in, out) layout so the kernel can do x @ W directly.
    return jax.random.uniform(key, (fan_in, fan_out), jnp.float32, -bound, bound)


def init_params(key, hid_dim):
    D = hid_dim
    ks = jax.random.split(key, 6)
    return {
        "ln1_g": jnp.ones((1, D), jnp.float32),
        "ln1_b": jnp.zeros((1, D), jnp.float32),
        "wq": _xavier_uniform(ks[0], D, D),
        "wk": _xavier_uniform(ks[1], D, D),
        "wv": _xavier_uniform(ks[2], D, D),
        "wo": _xavier_uniform(ks[3], D, D),
        "bo": jnp.zeros((1, D), jnp.float32),
        "ln2_g": jnp.ones((1, D), jnp.float32),
        "ln2_b": jnp.zeros((1, D), jnp.float32),
        "w1": _xavier_uniform(ks[4], D, 2 * D),
        "b1": jnp.zeros((1, 2 * D), jnp.float32),
        "w2": _xavier_uniform(ks[5], 2 * D, D),
        "b2": jnp.zeros((1, D), jnp.float32),
    }


# ---------------- pure-JAX f32 reference (PyTorch semantics) ----------------
def reference(x, p, heads):
    B, N, D = x.shape
    dk = D // heads

    def ln(t, g, b):
        mu = jnp.mean(t, -1, keepdims=True)
        var = jnp.mean((t - mu) ** 2, -1, keepdims=True)
        return (t - mu) / jnp.sqrt(var + LN_EPS) * g + b

    xn = ln(x, p["ln1_g"][0], p["ln1_b"][0])
    q = xn @ p["wq"]
    k = xn @ p["wk"]
    v = xn @ p["wv"]
    q = q.reshape(B, N, heads, dk).transpose(0, 2, 1, 3) * dk ** (-0.5)
    k = k.reshape(B, N, heads, dk).transpose(0, 2, 1, 3)
    v = v.reshape(B, N, heads, dk).transpose(0, 2, 1, 3)
    logits = jnp.einsum("bhid,bhjd->bhij", q, k)
    attn = jax.nn.softmax(logits, axis=-1)
    o = jnp.einsum("bhij,bhjd->bhid", attn, v)
    o = o.transpose(0, 2, 1, 3).reshape(B, N, D)
    x1 = x + (o @ p["wo"] + p["bo"][0])
    xn2 = ln(x1, p["ln2_g"][0], p["ln2_b"][0])
    h1 = xn2 @ p["w1"] + p["b1"][0]
    h1 = 0.5 * h1 * (1.0 + lax.erf(h1 / jnp.sqrt(2.0)))
    y = x1 + (h1 @ p["w2"] + p["b2"][0])
    return y, attn


if __name__ == "__main__":
    B, N, D, H = 2, 8, 32, 4   # batch, seq, hid_dim, heads (dim_key = dim_value = 8)

    key = jax.random.PRNGKey(0)
    kx, kp = jax.random.split(key)
    x = jax.random.normal(kx, (B, N, D), jnp.float32)
    params = init_params(kp, D)

    y, attn = transformer_layer(x, params, H)
    y = jax.block_until_ready(y)
    attn = jax.block_until_ready(attn)

    y_ref, attn_ref = reference(x, params, H)

    # Tolerances account for bf16 MXU operands (f32 accumulation); the f32
    # reference is the exact PyTorch semantics.
    assert jnp.allclose(attn, attn_ref, atol=2e-2, rtol=2e-2), "attention mismatch"
    assert jnp.allclose(y, y_ref, atol=5e-2, rtol=5e-2), "output mismatch"
    rel = jnp.sqrt(jnp.sum((y - y_ref) ** 2) / jnp.sum(y_ref ** 2))
    assert rel < 2e-2, f"relative error too large: {rel}"

    print("KERNEL_OK")
</pallas_src>

<mosaic_0001>
module attributes {stable_mosaic.version = 11 : i64} {
  func.func @transformer_layer_kernel(%arg0: i32, %arg1: i32, %arg2: memref<1x8x32xf32, #tpu.memory_space<vmem>>, %arg3: memref<1x32xf32, #tpu.memory_space<vmem>>, %arg4: memref<1x32xf32, #tpu.memory_space<vmem>>, %arg5: memref<32x96xbf16, #tpu.memory_space<vmem>>, %arg6: memref<32x32xbf16, #tpu.memory_space<vmem>>, %arg7: memref<1x32xf32, #tpu.memory_space<vmem>>, %arg8: memref<32x64xbf16, #tpu.memory_space<vmem>>, %arg9: memref<1x64xf32, #tpu.memory_space<vmem>>, %arg10: memref<64x32xbf16, #tpu.memory_space<vmem>>, %arg11: memref<1x32xf32, #tpu.memory_space<vmem>>, %arg12: memref<1x8x32xf32, #tpu.memory_space<vmem>>, %arg13: memref<1x4x8x8xf32, #tpu.memory_space<vmem>>, %arg14: memref<8x32xbf16, #tpu.memory_space<vmem>>, %arg15: memref<8x32xbf16, #tpu.memory_space<vmem>>, %arg16: memref<8x32xbf16, #tpu.memory_space<vmem>>) attributes {dimension_semantics = [#tpu.dimension_semantics<parallel>, #tpu.dimension_semantics<arbitrary>], iteration_bounds = array<i64: 2, 1>, scalar_prefetch = 0 : i64, scratch_operands = 3 : i64, tpu.core_type = #tpu.core_type<tc>, window_params = [{transform_indices = @transform_0, window_bounds = array<i64: 1, 8, 32>}, {pipeline_mode = #tpu.pipeline_mode<synchronous>, transform_indices = @transform_1, window_bounds = array<i64: 1, 32>}, {pipeline_mode = #tpu.pipeline_mode<synchronous>, transform_indices = @transform_2, window_bounds = array<i64: 1, 32>}, {pipeline_mode = #tpu.pipeline_mode<synchronous>, transform_indices = @transform_3, window_bounds = array<i64: 32, 96>}, {pipeline_mode = #tpu.pipeline_mode<synchronous>, transform_indices = @transform_4, window_bounds = array<i64: 32, 32>}, {pipeline_mode = #tpu.pipeline_mode<synchronous>, transform_indices = @transform_5, window_bounds = array<i64: 1, 32>}, {pipeline_mode = #tpu.pipeline_mode<synchronous>, transform_indices = @transform_6, window_bounds = array<i64: 32, 64>}, {pipeline_mode = #tpu.pipeline_mode<synchronous>, transform_indices = @transform_7, window_bounds = array<i64: 1, 64>}, {pipeline_mode = #tpu.pipeline_mode<synchronous>, transform_indices = @transform_8, window_bounds = array<i64: 64, 32>}, {pipeline_mode = #tpu.pipeline_mode<synchronous>, transform_indices = @transform_9, window_bounds = array<i64: 1, 32>}, {transform_indices = @transform_10, window_bounds = array<i64: 1, 8, 32>}, {transform_indices = @transform_11, window_bounds = array<i64: 1, 4, 8, 8>}]} {
    %c0_i32 = arith.constant 0 : i32
    %0 = arith.cmpi eq, %arg1, %c0_i32 : i32
    %1 = arith.extui %0 : i1 to i32
    %c0_i32_0 = arith.constant 0 : i32
    %2 = arith.cmpi ne, %1, %c0_i32_0 : i32
    scf.if %2 {
      %c0_83 = arith.constant 0 : index
      %c0_84 = arith.constant 0 : index
      %c0_85 = arith.constant 0 : index
      %153 = vector.load %arg2[%c0_83, %c0_84, %c0_85] : memref<1x8x32xf32, #tpu.memory_space<vmem>>, vector<1x8x32xf32>
      %154 = vector.shape_cast %153 : vector<1x8x32xf32> to vector<8x32xf32>
      %c0_86 = arith.constant 0 : index
      %c0_87 = arith.constant 0 : index
      %155 = vector.load %arg3[%c0_86, %c0_87] : memref<1x32xf32, #tpu.memory_space<vmem>>, vector<1x32xf32>
      %156 = vector.shape_cast %155 : vector<1x32xf32> to vector<32xf32>
      %c0_88 = arith.constant 0 : index
      %c0_89 = arith.constant 0 : index
      %157 = vector.load %arg4[%c0_88, %c0_89] : memref<1x32xf32, #tpu.memory_space<vmem>>, vector<1x32xf32>
      %158 = vector.shape_cast %157 : vector<1x32xf32> to vector<32xf32>
      %cst_90 = arith.constant dense<0.000000e+00> : vector<8xf32>
      %159 = vector.multi_reduction <add>, %154, %cst_90 [1] : vector<8x32xf32> to vector<8xf32>
      %160 = vector.shape_cast %159 : vector<8xf32> to vector<8x1xf32>
      %cst_91 = arith.constant 3.200000e+01 : f32
      %161 = vector.broadcast %cst_91 : f32 to vector<8x1xf32>
      %162 = arith.divf %160, %161 : vector<8x1xf32>
      %163 = vector.broadcast %162 : vector<8x1xf32> to vector<8x32xf32>
      %164 = arith.subf %154, %163 : vector<8x32xf32>
      %165 = arith.mulf %164, %164 : vector<8x32xf32>
      %cst_92 = arith.constant dense<0.000000e+00> : vector<8xf32>
      %166 = vector.multi_reduction <add>, %165, %cst_92 [1] : vector<8x32xf32> to vector<8xf32>
      %167 = vector.shape_cast %166 : vector<8xf32> to vector<8x1xf32>
      %cst_93 = arith.constant 3.200000e+01 : f32
      %168 = vector.broadcast %cst_93 : f32 to vector<8x1xf32>
      %169 = arith.divf %167, %168 : vector<8x1xf32>
      %170 = vector.broadcast %162 : vector<8x1xf32> to vector<8x32xf32>
      %171 = arith.subf %154, %170 : vector<8x32xf32>
      %cst_94 = arith.constant 9.99999974E-6 : f32
      %172 = vector.broadcast %cst_94 : f32 to vector<8x1xf32>
      %173 = arith.addf %169, %172 : vector<8x1xf32>
      %174 = math.rsqrt %173 : vector<8x1xf32>
      %175 = vector.broadcast %174 : vector<8x1xf32> to vector<8x32xf32>
      %176 = arith.mulf %171, %175 : vector<8x32xf32>
      %177 = vector.shape_cast %156 : vector<32xf32> to vector<1x32xf32>
      %178 = vector.broadcast %177 : vector<1x32xf32> to vector<8x32xf32>
      %179 = arith.mulf %176, %178 : vector<8x32xf32>
      %180 = vector.shape_cast %158 : vector<32xf32> to vector<1x32xf32>
      %181 = vector.broadcast %180 : vector<1x32xf32> to vector<8x32xf32>
      %182 = arith.addf %179, %181 : vector<8x32xf32>
      %183 = arith.truncf %182 : vector<8x32xf32> to vector<8x32xbf16>
      %c0_95 = arith.constant 0 : index
      %c0_96 = arith.constant 0 : index
      %184 = vector.load %arg5[%c0_95, %c0_96] : memref<32x96xbf16, #tpu.memory_space<vmem>>, vector<32x96xbf16>
      %cst_97 = arith.constant dense<0.000000e+00> : vector<8x96xf32>
      %185 = tpu.matmul %183, %184, %cst_97 {dimension_numbers = #tpu.dot_dimension_numbers<[1], [0], [0], [1], [0, 0, 1, 1], [], []>} : vector<8x32xbf16>, vector<32x96xbf16>, vector<8x96xf32> -> vector<8x96xf32>
      %186 = vector.extract_strided_slice %185 {offsets = [0, 0], sizes = [8, 32], strides = [1, 1]} : vector<8x96xf32> to vector<8x32xf32>
      %187 = arith.truncf %186 : vector<8x32xf32> to vector<8x32xbf16>
      %c0_98 = arith.constant 0 : index
      %c0_99 = arith.constant 0 : index
      %188 = vector.load %arg14[%c0_98, %c0_99] : memref<8x32xbf16, #tpu.memory_space<vmem>>, vector<8x32xbf16>
      tpu.vector_store %arg14[%c0_98, %c0_99], %187 {strides = array<i32>} : memref<8x32xbf16, #tpu.memory_space<vmem>>, vector<8x32xbf16>,
      %189 = vector.extract_strided_slice %185 {offsets = [0, 32], sizes = [8, 32], strides = [1, 1]} : vector<8x96xf32> to vector<8x32xf32>
      %190 = arith.truncf %189 : vector<8x32xf32> to vector<8x32xbf16>
      %c0_100 = arith.constant 0 : index
      %c0_101 = arith.constant 0 : index
      %191 = vector.load %arg15[%c0_100, %c0_101] : memref<8x32xbf16, #tpu.memory_space<vmem>>, vector<8x32xbf16>
      tpu.vector_store %arg15[%c0_100, %c0_101], %190 {strides = array<i32>} : memref<8x32xbf16, #tpu.memory_space<vmem>>, vector<8x32xbf16>,
      %192 = vector.extract_strided_slice %185 {offsets = [0, 64], sizes = [8, 32], strides = [1, 1]} : vector<8x96xf32> to vector<8x32xf32>
      %193 = arith.truncf %192 : vector<8x32xf32> to vector<8x32xbf16>
      %c0_102 = arith.constant 0 : index
      %c0_103 = arith.constant 0 : index
      %194 = vector.load %arg16[%c0_102, %c0_103] : memref<8x32xbf16, #tpu.memory_space<vmem>>, vector<8x32xbf16>
      tpu.vector_store %arg16[%c0_102, %c0_103], %193 {strides = array<i32>} : memref<8x32xbf16, #tpu.memory_space<vmem>>, vector<8x32xbf16>,
    } else {
    }
    %c8_i32 = arith.constant 8 : i32
    %3 = arith.muli %arg1, %c8_i32 : i32
    %4 = tpu.assume_multiple %3, 8 : i32
    %c0 = arith.constant 0 : index
    %5 = arith.index_cast %4 : i32 to index
    %c0_1 = arith.constant 0 : index
    %6 = vector.load %arg2[%c0, %5, %c0_1] : memref<1x8x32xf32, #tpu.memory_space<vmem>>, vector<1x8x32xf32>
    %7 = vector.shape_cast %6 : vector<1x8x32xf32> to vector<8x32xf32>
    %cst = arith.constant 0.000000e+00 : f32
    %8 = vector.broadcast %cst : f32 to vector<8x32xf32>
    %9 = arith.index_cast %4 : i32 to index
    %c0_2 = arith.constant 0 : index
    %10 = vector.load %arg14[%9, %c0_2] : memref<8x32xbf16, #tpu.memory_space<vmem>>, vector<8x8xbf16>
    %c0_3 = arith.constant 0 : index
    %c0_4 = arith.constant 0 : index
    %11 = vector.load %arg15[%c0_3, %c0_4] : memref<8x32xbf16, #tpu.memory_space<vmem>>, vector<8x8xbf16>
    %c0_5 = arith.constant 0 : index
    %c0_6 = arith.constant 0 : index
    %12 = vector.load %arg16[%c0_5, %c0_6] : memref<8x32xbf16, #tpu.memory_space<vmem>>, vector<8x8xbf16>
    %cst_7 = arith.constant dense<0.000000e+00> : vector<8x8xf32>
    %13 = tpu.matmul %10, %11, %cst_7 {dimension_numbers = #tpu.dot_dimension_numbers<[1], [1], [0], [0], [0, 0, 1, 0], [], []>} : vector<8x8xbf16>, vector<8x8xbf16>, vector<8x8xf32> -> vector<8x8xf32>
    %cst_8 = arith.constant dense<0xFF800000> : vector<8xf32>
    %14 = vector.multi_reduction <maximumf>, %13, %cst_8 [1] : vector<8x8xf32> to vector<8xf32>
    %15 = vector.shape_cast %14 : vector<8xf32> to vector<8x1xf32>
    %16 = vector.broadcast %15 : vector<8x1xf32> to vector<8x8xf32>
    %17 = arith.subf %13, %16 : vector<8x8xf32>
    %18 = math.exp %17 : vector<8x8xf32>
    %cst_9 = arith.constant dense<0.000000e+00> : vector<8xf32>
    %19 = vector.multi_reduction <add>, %18, %cst_9 [1] : vector<8x8xf32> to vector<8xf32>
    %20 = vector.shape_cast %19 : vector<8xf32> to vector<8x1xf32>
    %21 = vector.broadcast %20 : vector<8x1xf32> to vector<8x8xf32>
    %22 = arith.divf %18, %21 : vector<8x8xf32>
    %c0_10 = arith.constant 0 : index
    %c0_11 = arith.constant 0 : index
    %c0_12 = arith.constant 0 : index
    %c0_13 = arith.constant 0 : index
    %23 = vector.load %arg13[%c0_10, %c0_11, %c0_12, %c0_13] : memref<1x4x8x8xf32, #tpu.memory_space<vmem>>, vector<1x1x8x8xf32>
    %24 = vector.shape_cast %23 : vector<1x1x8x8xf32> to vector<8x8xf32>
    %25 = vector.shape_cast %22 : vector<8x8xf32> to vector<1x1x8x8xf32>
    tpu.vector_store %arg13[%c0_10, %c0_11, %c0_12, %c0_13], %25 {strides = array<i32>} : memref<1x4x8x8xf32, #tpu.memory_space<vmem>>, vector<1x1x8x8xf32>,
    %26 = arith.truncf %22 : vector<8x8xf32> to vector<8x8xbf16>
    %cst_14 = arith.constant dense<0.000000e+00> : vector<8x8xf32>
    %27 = tpu.matmul %26, %12, %cst_14 {dimension_numbers = #tpu.dot_dimension_numbers<[1], [0], [0], [1], [0, 0, 1, 1], [], []>} : vector<8x8xbf16>, vector<8x8xbf16>, vector<8x8xf32> -> vector<8x8xf32>
    %28 = arith.truncf %27 : vector<8x8xf32> to vector<8x8xbf16>
    %c0_15 = arith.constant 0 : index
    %c0_16 = arith.constant 0 : index
    %29 = vector.load %arg6[%c0_15, %c0_16] : memref<32x32xbf16, #tpu.memory_space<vmem>>, vector<8x32xbf16>
    %cst_17 = arith.constant dense<0.000000e+00> : vector<8x32xf32>
    %30 = tpu.matmul %28, %29, %cst_17 {dimension_numbers = #tpu.dot_dimension_numbers<[1], [0], [0], [1], [0, 0, 1, 1], [], []>} : vector<8x8xbf16>, vector<8x32xbf16>, vector<8x32xf32> -> vector<8x32xf32>
    %31 = arith.addf %8, %30 : vector<8x32xf32>
    %32 = arith.index_cast %4 : i32 to index
    %c8 = arith.constant 8 : index
    %33 = vector.load %arg14[%32, %c8] : memref<8x32xbf16, #tpu.memory_space<vmem>>, vector<8x8xbf16>
    %c0_18 = arith.constant 0 : index
    %c8_19 = arith.constant 8 : index
    %34 = vector.load %arg15[%c0_18, %c8_19] : memref<8x32xbf16, #tpu.memory_space<vmem>>, vector<8x8xbf16>
    %c0_20 = arith.constant 0 : index
    %c8_21 = arith.constant 8 : index
    %35 = vector.load %arg16[%c0_20, %c8_21] : memref<8x32xbf16, #tpu.memory_space<vmem>>, vector<8x8xbf16>
    %cst_22 = arith.constant dense<0.000000e+00> : vector<8x8xf32>
    %36 = tpu.matmul %33, %34, %cst_22 {dimension_numbers = #tpu.dot_dimension_numbers<[1], [1], [0], [0], [0, 0, 1, 0], [], []>} : vector<8x8xbf16>, vector<8x8xbf16>, vector<8x8xf32> -> vector<8x8xf32>
    %cst_23 = arith.constant dense<0xFF800000> : vector<8xf32>
    %37 = vector.multi_reduction <maximumf>, %36, %cst_23 [1] : vector<8x8xf32> to vector<8xf32>
    %38 = vector.shape_cast %37 : vector<8xf32> to vector<8x1xf32>
    %39 = vector.broadcast %38 : vector<8x1xf32> to vector<8x8xf32>
    %40 = arith.subf %36, %39 : vector<8x8xf32>
    %41 = math.exp %40 : vector<8x8xf32>
    %cst_24 = arith.constant dense<0.000000e+00> : vector<8xf32>
    %42 = vector.multi_reduction <add>, %41, %cst_24 [1] : vector<8x8xf32> to vector<8xf32>
    %43 = vector.shape_cast %42 : vector<8xf32> to vector<8x1xf32>
    %44 = vector.broadcast %43 : vector<8x1xf32> to vector<8x8xf32>
    %45 = arith.divf %41, %44 : vector<8x8xf32>
    %c0_25 = arith.constant 0 : index
    %c1 = arith.constant 1 : index
    %c0_26 = arith.constant 0 : index
    %c0_27 = arith.constant 0 : index
    %46 = vector.load %arg13[%c0_25, %c1, %c0_26, %c0_27] : memref<1x4x8x8xf32, #tpu.memory_space<vmem>>, vector<1x1x8x8xf32>
    %47 = vector.shape_cast %46 : vector<1x1x8x8xf32> to vector<8x8xf32>
    %48 = vector.shape_cast %45 : vector<8x8xf32> to vector<1x1x8x8xf32>
    tpu.vector_store %arg13[%c0_25, %c1, %c0_26, %c0_27], %48 {strides = array<i32>} : memref<1x4x8x8xf32, #tpu.memory_space<vmem>>, vector<1x1x8x8xf32>,
    %49 = arith.truncf %45 : vector<8x8xf32> to vector<8x8xbf16>
    %cst_28 = arith.constant dense<0.000000e+00> : vector<8x8xf32>
    %50 = tpu.matmul %49, %35, %cst_28 {dimension_numbers = #tpu.dot_dimension_numbers<[1], [0], [0], [1], [0, 0, 1, 1], [], []>} : vector<8x8xbf16>, vector<8x8xbf16>, vector<8x8xf32> -> vector<8x8xf32>
    %51 = arith.truncf %50 : vector<8x8xf32> to vector<8x8xbf16>
    %c8_29 = arith.constant 8 : index
    %c0_30 = arith.constant 0 : index
    %52 = vector.load %arg6[%c8_29, %c0_30] : memref<32x32xbf16, #tpu.memory_space<vmem>>, vector<8x32xbf16>
    %cst_31 = arith.constant dense<0.000000e+00> : vector<8x32xf32>
    %53 = tpu.matmul %51, %52, %cst_31 {dimension_numbers = #tpu.dot_dimension_numbers<[1], [0], [0], [1], [0, 0, 1, 1], [], []>} : vector<8x8xbf16>, vector<8x32xbf16>, vector<8x32xf32> -> vector<8x32xf32>
    %54 = arith.addf %31, %53 : vector<8x32xf32>
    %55 = arith.index_cast %4 : i32 to index
    %c16 = arith.constant 16 : index
    %56 = vector.load %arg14[%55, %c16] : memref<8x32xbf16, #tpu.memory_space<vmem>>, vector<8x8xbf16>
    %c0_32 = arith.constant 0 : index
    %c16_33 = arith.constant 16 : index
    %57 = vector.load %arg15[%c0_32, %c16_33] : memref<8x32xbf16, #tpu.memory_space<vmem>>, vector<8x8xbf16>
    %c0_34 = arith.constant 0 : index
    %c16_35 = arith.constant 16 : index
    %58 = vector.load %arg16[%c0_34, %c16_35] : memref<8x32xbf16, #tpu.memory_space<vmem>>, vector<8x8xbf16>
    %cst_36 = arith.constant dense<0.000000e+00> : vector<8x8xf32>
    %59 = tpu.matmul %56, %57, %cst_36 {dimension_numbers = #tpu.dot_dimension_numbers<[1], [1], [0], [0], [0, 0, 1, 0], [], []>} : vector<8x8xbf16>, vector<8x8xbf16>, vector<8x8xf32> -> vector<8x8xf32>
    %cst_37 = arith.constant dense<0xFF800000> : vector<8xf32>
    %60 = vector.multi_reduction <maximumf>, %59, %cst_37 [1] : vector<8x8xf32> to vector<8xf32>
    %61 = vector.shape_cast %60 : vector<8xf32> to vector<8x1xf32>
    %62 = vector.broadcast %61 : vector<8x1xf32> to vector<8x8xf32>
    %63 = arith.subf %59, %62 : vector<8x8xf32>
    %64 = math.exp %63 : vector<8x8xf32>
    %cst_38 = arith.constant dense<0.000000e+00> : vector<8xf32>
    %65 = vector.multi_reduction <add>, %64, %cst_38 [1] : vector<8x8xf32> to vector<8xf32>
    %66 = vector.shape_cast %65 : vector<8xf32> to vector<8x1xf32>
    %67 = vector.broadcast %66 : vector<8x1xf32> to vector<8x8xf32>
    %68 = arith.divf %64, %67 : vector<8x8xf32>
    %c0_39 = arith.constant 0 : index
    %c2 = arith.constant 2 : index
    %c0_40 = arith.constant 0 : index
    %c0_41 = arith.constant 0 : index
    %69 = vector.load %arg13[%c0_39, %c2, %c0_40, %c0_41] : memref<1x4x8x8xf32, #tpu.memory_space<vmem>>, vector<1x1x8x8xf32>
    %70 = vector.shape_cast %69 : vector<1x1x8x8xf32> to vector<8x8xf32>
    %71 = vector.shape_cast %68 : vector<8x8xf32> to vector<1x1x8x8xf32>
    tpu.vector_store %arg13[%c0_39, %c2, %c0_40, %c0_41], %71 {strides = array<i32>} : memref<1x4x8x8xf32, #tpu.memory_space<vmem>>, vector<1x1x8x8xf32>,
    %72 = arith.truncf %68 : vector<8x8xf32> to vector<8x8xbf16>
    %cst_42 = arith.constant dense<0.000000e+00> : vector<8x8xf32>
    %73 = tpu.matmul %72, %58, %cst_42 {dimension_numbers = #tpu.dot_dimension_numbers<[1], [0], [0], [1], [0, 0, 1, 1], [], []>} : vector<8x8xbf16>, vector<8x8xbf16>, vector<8x8xf32> -> vector<8x8xf32>
    %74 = arith.truncf %73 : vector<8x8xf32> to vector<8x8xbf16>
    %c16_43 = arith.constant 16 : index
    %c0_44 = arith.constant 0 : index
    %75 = vector.load %arg6[%c16_43, %c0_44] : memref<32x32xbf16, #tpu.memory_space<vmem>>, vector<8x32xbf16>
    %cst_45 = arith.constant dense<0.000000e+00> : vector<8x32xf32>
    %76 = tpu.matmul %74, %75, %cst_45 {dimension_numbers = #tpu.dot_dimension_numbers<[1], [0], [0], [1], [0, 0, 1, 1], [], []>} : vector<8x8xbf16>, vector<8x32xbf16>, vector<8x32xf32> -> vector<8x32xf32>
    %77 = arith.addf %54, %76 : vector<8x32xf32>
    %78 = arith.index_cast %4 : i32 to index
    %c24 = arith.constant 24 : index
    %79 = vector.load %arg14[%78, %c24] : memref<8x32xbf16, #tpu.memory_space<vmem>>, vector<8x8xbf16>
    %c0_46 = arith.constant 0 : index
    %c24_47 = arith.constant 24 : index
    %80 = vector.load %arg15[%c0_46, %c24_47] : memref<8x32xbf16, #tpu.memory_space<vmem>>, vector<8x8xbf16>
    %c0_48 = arith.constant 0 : index
    %c24_49 = arith.constant 24 : index
    %81 = vector.load %arg16[%c0_48, %c24_49] : memref<8x32xbf16, #tpu.memory_space<vmem>>, vector<8x8xbf16>
    %cst_50 = arith.constant dense<0.000000e+00> : vector<8x8xf32>
    %82 = tpu.matmul %79, %80, %cst_50 {dimension_numbers = #tpu.dot_dimension_numbers<[1], [1], [0], [0], [0, 0, 1, 0], [], []>} : vector<8x8xbf16>, vector<8x8xbf16>, vector<8x8xf32> -> vector<8x8xf32>
    %cst_51 = arith.constant dense<0xFF800000> : vector<8xf32>
    %83 = vector.multi_reduction <maximumf>, %82, %cst_51 [1] : vector<8x8xf32> to vector<8xf32>
    %84 = vector.shape_cast %83 : vector<8xf32> to vector<8x1xf32>
    %85 = vector.broadcast %84 : vector<8x1xf32> to vector<8x8xf32>
    %86 = arith.subf %82, %85 : vector<8x8xf32>
    %87 = math.exp %86 : vector<8x8xf32>
    %cst_52 = arith.constant dense<0.000000e+00> : vector<8xf32>
    %88 = vector.multi_reduction <add>, %87, %cst_52 [1] : vector<8x8xf32> to vector<8xf32>
    %89 = vector.shape_cast %88 : vector<8xf32> to vector<8x1xf32>
    %90 = vector.broadcast %89 : vector<8x1xf32> to vector<8x8xf32>
    %91 = arith.divf %87, %90 : vector<8x8xf32>
    %c0_53 = arith.constant 0 : index
    %c3 = arith.constant 3 : index
    %c0_54 = arith.constant 0 : index
    %c0_55 = arith.constant 0 : index
    %92 = vector.load %arg13[%c0_53, %c3, %c0_54, %c0_55] : memref<1x4x8x8xf32, #tpu.memory_space<vmem>>, vector<1x1x8x8xf32>
    %93 = vector.shape_cast %92 : vector<1x1x8x8xf32> to vector<8x8xf32>
    %94 = vector.shape_cast %91 : vector<8x8xf32> to vector<1x1x8x8xf32>
    tpu.vector_store %arg13[%c0_53, %c3, %c0_54, %c0_55], %94 {strides = array<i32>} : memref<1x4x8x8xf32, #tpu.memory_space<vmem>>, vector<1x1x8x8xf32>,
    %95 = arith.truncf %91 : vector<8x8xf32> to vector<8x8xbf16>
    %cst_56 = arith.constant dense<0.000000e+00> : vector<8x8xf32>
    %96 = tpu.matmul %95, %81, %cst_56 {dimension_numbers = #tpu.dot_dimension_numbers<[1], [0], [0], [1], [0, 0, 1, 1], [], []>} : vector<8x8xbf16>, vector<8x8xbf16>, vector<8x8xf32> -> vector<8x8xf32>
    %97 = arith.truncf %96 : vector<8x8xf32> to vector<8x8xbf16>
    %c24_57 = arith.constant 24 : index
    %c0_58 = arith.constant 0 : index
    %98 = vector.load %arg6[%c24_57, %c0_58] : memref<32x32xbf16, #tpu.memory_space<vmem>>, vector<8x32xbf16>
    %cst_59 = arith.constant dense<0.000000e+00> : vector<8x32xf32>
    %99 = tpu.matmul %97, %98, %cst_59 {dimension_numbers = #tpu.dot_dimension_numbers<[1], [0], [0], [1], [0, 0, 1, 1], [], []>} : vector<8x8xbf16>, vector<8x32xbf16>, vector<8x32xf32> -> vector<8x32xf32>
    %100 = arith.addf %77, %99 : vector<8x32xf32>
    %101 = arith.addf %7, %100 : vector<8x32xf32>
    %c0_60 = arith.constant 0 : index
    %c0_61 = arith.constant 0 : index
    %102 = vector.load %arg7[%c0_60, %c0_61] : memref<1x32xf32, #tpu.memory_space<vmem>>, vector<1x32xf32>
    %103 = vector.shape_cast %102 : vector<1x32xf32> to vector<32xf32>
    %104 = vector.shape_cast %103 : vector<32xf32> to vector<1x32xf32>
    %105 = vector.broadcast %104 : vector<1x32xf32> to vector<8x32xf32>
    %106 = arith.addf %101, %105 : vector<8x32xf32>
    %cst_62 = arith.constant dense<0.000000e+00> : vector<8xf32>
    %107 = vector.multi_reduction <add>, %106, %cst_62 [1] : vector<8x32xf32> to vector<8xf32>
    %108 = vector.shape_cast %107 : vector<8xf32> to vector<8x1xf32>
    %cst_63 = arith.constant 3.200000e+01 : f32
    %109 = vector.broadcast %cst_63 : f32 to vector<8x1xf32>
    %110 = arith.divf %108, %109 : vector<8x1xf32>
    %111 = vector.broadcast %110 : vector<8x1xf32> to vector<8x32xf32>
    %112 = arith.subf %106, %111 : vector<8x32xf32>
    %113 = arith.mulf %112, %112 : vector<8x32xf32>
    %cst_64 = arith.constant dense<0.000000e+00> : vector<8xf32>
    %114 = vector.multi_reduction <add>, %113, %cst_64 [1] : vector<8x32xf32> to vector<8xf32>
    %115 = vector.shape_cast %114 : vector<8xf32> to vector<8x1xf32>
    %cst_65 = arith.constant 3.200000e+01 : f32
    %116 = vector.broadcast %cst_65 : f32 to vector<8x1xf32>
    %117 = arith.divf %115, %116 : vector<8x1xf32>
    %118 = vector.broadcast %110 : vector<8x1xf32> to vector<8x32xf32>
    %119 = arith.subf %106, %118 : vector<8x32xf32>
    %cst_66 = arith.constant 9.99999974E-6 : f32
    %120 = vector.broadcast %cst_66 : f32 to vector<8x1xf32>
    %121 = arith.addf %117, %120 : vector<8x1xf32>
    %122 = math.rsqrt %121 : vector<8x1xf32>
    %123 = vector.broadcast %122 : vector<8x1xf32> to vector<8x32xf32>
    %124 = arith.mulf %119, %123 : vector<8x32xf32>
    %125 = arith.truncf %124 : vector<8x32xf32> to vector<8x32xbf16>
    %c0_67 = arith.constant 0 : index
    %c0_68 = arith.constant 0 : index
    %126 = vector.load %arg8[%c0_67, %c0_68] : memref<32x64xbf16, #tpu.memory_space<vmem>>, vector<32x64xbf16>
    %cst_69 = arith.constant dense<0.000000e+00> : vector<8x64xf32>
    %127 = tpu.matmul %125, %126, %cst_69 {dimension_numbers = #tpu.dot_dimension_numbers<[1], [0], [0], [1], [0, 0, 1, 1], [], []>} : vector<8x32xbf16>, vector<32x64xbf16>, vector<8x64xf32> -> vector<8x64xf32>
    %c0_70 = arith.constant 0 : index
    %c0_71 = arith.constant 0 : index
    %128 = vector.load %arg9[%c0_70, %c0_71] : memref<1x64xf32, #tpu.memory_space<vmem>>, vector<1x64xf32>
    %129 = vector.shape_cast %128 : vector<1x64xf32> to vector<64xf32>
    %130 = vector.shape_cast %129 : vector<64xf32> to vector<1x64xf32>
    %131 = vector.broadcast %130 : vector<1x64xf32> to vector<8x64xf32>
    %132 = arith.addf %127, %131 : vector<8x64xf32>
    %cst_72 = arith.constant 5.000000e-01 : f32
    %133 = vector.broadcast %cst_72 : f32 to vector<8x64xf32>
    %134 = arith.mulf %133, %132 : vector<8x64xf32>
    %cst_73 = arith.constant 0.707106769 : f32
    %135 = vector.broadcast %cst_73 : f32 to vector<8x64xf32>
    %136 = arith.mulf %132, %135 : vector<8x64xf32>
    %137 = math.erf %136 : vector<8x64xf32>
    %cst_74 = arith.constant 1.000000e+00 : f32
    %138 = vector.broadcast %cst_74 : f32 to vector<8x64xf32>
    %139 = arith.addf %138, %137 : vector<8x64xf32>
    %140 = arith.mulf %134, %139 : vector<8x64xf32>
    %141 = arith.truncf %140 : vector<8x64xf32> to vector<8x64xbf16>
    %c0_75 = arith.constant 0 : index
    %c0_76 = arith.constant 0 : index
    %142 = vector.load %arg10[%c0_75, %c0_76] : memref<64x32xbf16, #tpu.memory_space<vmem>>, vector<64x32xbf16>
    %cst_77 = arith.constant dense<0.000000e+00> : vector<8x32xf32>
    %143 = tpu.matmul %141, %142, %cst_77 {dimension_numbers = #tpu.dot_dimension_numbers<[1], [0], [0], [1], [0, 0, 1, 1], [], []>} : vector<8x64xbf16>, vector<64x32xbf16>, vector<8x32xf32> -> vector<8x32xf32>
    %c0_78 = arith.constant 0 : index
    %c0_79 = arith.constant 0 : index
    %144 = vector.load %arg11[%c0_78, %c0_79] : memref<1x32xf32, #tpu.memory_space<vmem>>, vector<1x32xf32>
    %145 = vector.shape_cast %144 : vector<1x32xf32> to vector<32xf32>
    %146 = vector.shape_cast %145 : vector<32xf32> to vector<1x32xf32>
    %147 = vector.broadcast %146 : vector<1x32xf32> to vector<8x32xf32>
    %148 = arith.addf %143, %147 : vector<8x32xf32>
    %149 = arith.addf %106, %148 : vector<8x32xf32>
    %c0_80 = arith.constant 0 : index
    %c0_81 = arith.constant 0 : index
    %c0_82 = arith.constant 0 : index
    %150 = vector.load %arg12[%c0_80, %c0_81, %c0_82] : memref<1x8x32xf32, #tpu.memory_space<vmem>>, vector<1x8x32xf32>
    %151 = vector.shape_cast %150 : vector<1x8x32xf32> to vector<8x32xf32>
    %152 = vector.shape_cast %149 : vector<8x32xf32> to vector<1x8x32xf32>
    tpu.vector_store %arg12[%c0_80, %c0_81, %c0_82], %152 {strides = array<i32>} : memref<1x8x32xf32, #tpu.memory_space<vmem>>, vector<1x8x32xf32>,
    return
  }
  func.func @transform_0(%arg0: i32, %arg1: i32) -> (i32, i32, i32) {
    %c0_i32 = arith.constant 0 : i32
    %c0_i32_0 = arith.constant 0 : i32
    %c0_i32_1 = arith.constant 0 : i32
    return %arg0, %c0_i32, %c0_i32_0 : i32, i32, i32
  }
  func.func @transform_1(%arg0: i32, %arg1: i32) -> (i32, i32) {
    %c0_i32 = arith.constant 0 : i32
    %c0_i32_0 = arith.constant 0 : i32
    %c0_i32_1 = arith.constant 0 : i32
    return %c0_i32, %c0_i32_0 : i32, i32
  }
  func.func @transform_2(%arg0: i32, %arg1: i32) -> (i32, i32) {
    %c0_i32 = arith.constant 0 : i32
    %c0_i32_0 = arith.constant 0 : i32
    %c0_i32_1 = arith.constant 0 : i32
    return %c0_i32, %c0_i32_0 : i32, i32
  }
  func.func @transform_3(%arg0: i32, %arg1: i32) -> (i32, i32) {
    %c0_i32 = arith.constant 0 : i32
    %c0_i32_0 = arith.constant 0 : i32
    %c0_i32_1 = arith.constant 0 : i32
    return %c0_i32, %c0_i32_0 : i32, i32
  }
  func.func @transform_4(%arg0: i32, %arg1: i32) -> (i32, i32) {
    %c0_i32 = arith.constant 0 : i32
    %c0_i32_0 = arith.constant 0 : i32
    %c0_i32_1 = arith.constant 0 : i32
    return %c0_i32, %c0_i32_0 : i32, i32
  }
  func.func @transform_5(%arg0: i32, %arg1: i32) -> (i32, i32) {
    %c0_i32 = arith.constant 0 : i32
    %c0_i32_0 = arith.constant 0 : i32
    %c0_i32_1 = arith.constant 0 : i32
    return %c0_i32, %c0_i32_0 : i32, i32
  }
  func.func @transform_6(%arg0: i32, %arg1: i32) -> (i32, i32) {
    %c0_i32 = arith.constant 0 : i32
    %c0_i32_0 = arith.constant 0 : i32
    %c0_i32_1 = arith.constant 0 : i32
    return %c0_i32, %c0_i32_0 : i32, i32
  }
  func.func @transform_7(%arg0: i32, %arg1: i32) -> (i32, i32) {
    %c0_i32 = arith.constant 0 : i32
    %c0_i32_0 = arith.constant 0 : i32
    %c0_i32_1 = arith.constant 0 : i32
    return %c0_i32, %c0_i32_0 : i32, i32
  }
  func.func @transform_8(%arg0: i32, %arg1: i32) -> (i32, i32) {
    %c0_i32 = arith.constant 0 : i32
    %c0_i32_0 = arith.constant 0 : i32
    %c0_i32_1 = arith.constant 0 : i32
    return %c0_i32, %c0_i32_0 : i32, i32
  }
  func.func @transform_9(%arg0: i32, %arg1: i32) -> (i32, i32) {
    %c0_i32 = arith.constant 0 : i32
    %c0_i32_0 = arith.constant 0 : i32
    %c0_i32_1 = arith.constant 0 : i32
    return %c0_i32, %c0_i32_0 : i32, i32
  }
  func.func @transform_10(%arg0: i32, %arg1: i32) -> (i32, i32, i32) {
    %c0_i32 = arith.constant 0 : i32
    %c0_i32_0 = arith.constant 0 : i32
    return %arg0, %arg1, %c0_i32 : i32, i32, i32
  }
  func.func @transform_11(%arg0: i32, %arg1: i32) -> (i32, i32, i32, i32) {
    %c0_i32 = arith.constant 0 : i32
    %c0_i32_0 = arith.constant 0 : i32
    %c0_i32_1 = arith.constant 0 : i32
    return %arg0, %c0_i32, %arg1, %c0_i32_0 : i32, i32, i32, i32
  }
}

</mosaic_0001>

<bundles_post_ra>
// kernel: tpu_custom_call.1
= control target key start
LH: loop header
LB: loop body
LE: loop exit
PB: predicated region body
PF: predicated region fallthrough
CT: control target
= control target key end

     0   :  { %s2421_s0 = inlined_call_operand.vmem [shape: f32[2,8,32], index: 0, kind: input, shape index: {}]   ;;  %s2422_s1 = inlined_call_operand.vmem [shape: f32[1,32], index: 1, kind: input, shape index: {}]   ;;  %s2423_s2 = inlined_call_operand.vmem [shape: f32[1,32], index: 2, kind: input, shape index: {}]   ;;  %s2424_s3 = inlined_call_operand.vmem [shape: bf16[32,96], index: 3, kind: input, shape index: {}]   ;;  %s2425_s4 = inlined_call_operand.vmem [shape: bf16[32,32], index: 4, kind: input, shape index: {}]   ;;  %s2426_s5 = inlined_call_operand.vmem [shape: f32[1,32], index: 5, kind: input, shape index: {}]   ;;  %s2427_s6 = inlined_call_operand.hbm [shape: bf16[32,64], index: 6, kind: input, shape index: {}]   ;;  %s2428_s7 = inlined_call_operand.vmem [shape: f32[1,64], index: 7, kind: input, shape index: {}]   ;;  %s2429_s8 = inlined_call_operand.vmem [shape: bf16[64,32], index: 8, kind: input, shape index: {}]   ;;  %s2430_s9 = inlined_call_operand.vmem [shape: f32[1,32], index: 9, kind: input, shape index: {}]   ;;  %s2431_s10 = inlined_call_operand.hbm [shape: f32[2,8,32], index: 10, kind: output, shape index: {0}]   ;;  %s2432_s11 = inlined_call_operand.hbm [shape: f32[2,4,8,8], index: 11, kind: output, shape index: {1}]  }
   0x1   :  { %2435 = sst [smem:[#allocation17_spill]] %s2421_s0 }
   0x2   :  { %2436 = sst [smem:[#allocation18_spill]] %s2422_s1 }
   0x3   :  { %2437 = sst [smem:[#allocation19_spill]] %s2423_s2 }
   0x4   :  { %17 = vsyncpa [#allocation6], 0 }
   0x5   :  { %18 = vsyncpa [#allocation7], 0 }
   0x6   :  { %20 = vsyncpa [#allocation7 + $0x1], 0 }
   0x7   :  { %21 = vsyncpa [#allocation10], 0 }
   0x8   :  { %23 = vsyncpa [#allocation10 + $0x1], 0  ;;  %s2083_s17 = smov 0   ;;  %s2085_s18 = smov 0  }
   0x9   :  { %s2087_s19 = smov 0   ;;  %s2089_s20 = smov 0  }
   0xa   :  { %s2091_s21 = smov 0   ;;  %s2093_s22 = smov 0  }
   0xb LB: > { %2438 = sst [smem:[#allocation14_spill]] %s2003_s21  ;;  %s1555_s23 = sadd.s32 4294967295, %s2007_s22   ;;  %s2007_s22 = sphi %s2093_s22, %s29_s22   ;;  %s2003_s21 = sphi %s2091_s21, %s2451_s21   ;;  %s1999_s20 = sphi %s2089_s20, %s2450_s20   ;;  %s1995_s19 = sphi %s2087_s19, %s2454_s19   ;;  %s1991_s18 = sphi %s2085_s18, %s2453_s18   ;;  %s1987_s17 = sphi %s2083_s17, %s2452_s17  }
   0xc   : > { %s1556_s24 = sadd.s32 4294967294, %s2007_s22   ;;  %s41_s25 = sadd.s32 1, %s2003_s21 }
   0xd   : > { %s265_s26 = sadd.s32 1, %s1995_s19  ;;  %p43_p0 = scmp.ge.s32.totalorder %s41_s25, 2 }
   0xe   : > { %p275_p1 = scmp.ne.s32.totalorder %s1995_s19, %s1991_s18  ;;  %p276_p2 = scmp.eq.s32.totalorder %s1555_s23, 1 }
   0xf   : > { %p281_p3 = scmp.ne.s32.totalorder %s1991_s18, %s1987_s17  ;;  %s2456_s25 = smov (%p43_p0, %s41_s25), 0 }
  0x10   : > { %2439 = sst [smem:[#allocation15_spill]] %s2456_s25  ;;  %p2123_p4 = por %p276_p2, %p275_p1 }
  0x11   : > { %p282_p5 = scmp.eq.s32.totalorder %s1556_s24, 1  ;;  %s260_s28 = ssub.s32 %s2003_s21, %s2456_s25 }
  0x12   : > { %p1557_p6 = scmp.ge.s32.totalorder %s2007_s22, 1  ;;  %p263_p7 = scmp.eq.s32.totalorder %s260_s28, 0 }
  0x13   : > { %p2130_p8 = por %p282_p5, %p281_p3  ;;  %p317_p9 = scmp.lt.s32.totalorder %s2007_s22, 3 }
  0x14   : > { %s2136_s30 = scalar_select %p263_p7, %s1995_s19, %s265_s26  }
  0x15   : > { %p2138_p10 = pnand %p1557_p6, %p317_p9  ;;  %p2142_p11 = scmp.eq.s32.totalorder %s1555_s23, 0 }
  0x16   : > { %2442 = sst [smem:[#allocation16_spill]] %s2136_s30  ;;  %s2009_s14 = smov [#allocation5]  }
  0x17   : > { %p1758_p12 = pneg %p2138_p10  ;;  %s344_s15 = sshll.u32 %s2009_s14, 4  ;;  %s345_s15 = int_to_ptr.vmem [resolvable:$true] %s344_s15 }
  0x18   : > { %s1882_s16 = scalar_lea.vmem %s345_s15, 256  ;;  %p1890_p5 = scmp.lt.s32.totalorder %s345_s15, %s345_s15 }
  0x19   : > { %p1759_p13 = pnand %p2142_p11, %p1758_p12  ;;  %p1883_p1 = scmp.ne.s32.totalorder %s345_s15, %s1882_s16 }
  0x1a   : > { %p1891_p6 = scmp.lt.s32.totalorder %s1882_s16, %s1882_s16 }
  0x1b   : > { %p1873_p0 = pneg %p1759_p13 }
  0x1c   : > { %p1892_p7 = por %p1891_p6, %p1890_p5 }
  0x1d   : > { %p1885_p2 = pnand %p1883_p1, %p1873_p0 }
  0x1f   : > { %p1886_p3 = pneg %p1885_p2 }
  0x21   : > { %p1893_p9 = pnand %p1892_p7, %p1886_p3 }
  0x23   : > { %1896 = shalt.err (!%p1893_p9)
}
  0x24   : > { %s2010_s23 = smov 64   ;;  %s2011_s24 = smov 4  }
  0x25   : > { %1761 = dma.hbm_to_vmem [thread:$0]  (!%p1759_p13), %s2427_s6, 256, %s345_s15, [#allocation6], %s2010_s23, %s2010_s23, %s2011_s24  }
  0x26   : > { %376 = sbr.rel (%p2138_p10) target bundleno = 3664 (0xe50), region = 60 }
  0x2b   : > { %1974 = dma.done.wait (%p2142_p11), [#allocation6], 256  }
  0x2c   : > { %1976 = vsyncadd (%p2142_p11), [#allocation6], 4294967040  ;;  %p420_p12 = scmp.lt.s32.totalorder %s1999_s20, 1  ;;  %s2445_s0 = sld [smem:[#allocation17_spill]]  ;;  %vm432_vm0 = vcmask 261120   ;;  %v1832_v7 = vld [vmem:[%s2424_s3 + $0x8] sm:$0xff]  }
  0x2d   : > { %v2012_v8 = vmov 0.0   ;;  %vm2013_vm1 = vmmov 0   ;;  %v1833_v9 = vld [vmem:[%s2424_s3] sm:$0xff]   ;;  %s2446_s1 = sld [smem:[#allocation18_spill]]  ;;  %vm522_vm2 = vcmask 257024   ;;  %s2014_s26 = smov 96  }
  0x2e   : > { %s421_s14 = scalar_select %p420_p12, %s1999_s20, 1  ;;  %1650 = vmatprep.subr.bf16.mxu1 %v2012_v8  ;;  %1654 = vmatprep.mubr.msk.bf16.mxu1 %vm2013_vm1, %v2012_v8  ;;  %vm545_vm3 = vcmask 64512   ;;  %vm608_vm4 = vcmask 1043456   ;;  %vm1354_vm5 = vcmask 523264  }
  0x2f   : > { %1651 = vmatpush3.bf16.msra.mxu1 %v1832_v7  ;;  %1664 = vmatprep.subr.bf16.mxu0 %v2012_v8  ;;  %s2447_s2 = sld [smem:[#allocation19_spill]]  ;;  %s2015_s28 = smov 120  }
  0x30   : > { %s1564_s16 = sshll.u32 %s421_s14, 3  ;;  %1652 = vmatprep.subr.bf16.mxu1 %v2012_v8  ;;  %1666 = vmatprep.mubr.msk.bf16.mxu0 %vm2013_vm1, %v2012_v8  ;;  %s2016_s14 = smov 64  }
  0x31   : > { %s2216_s12 = sand.u32 1, %s1991_s18   ;;  %s2018_s24 = smov 104  }
  0x32   : > { %s423_s30 = scalar_lea.vmem %s2445_s0, %s1564_s16  ;;  %s2017_s16 = smov 112  }
  0x33   : > { %v2164_v0 = vld [vmem:[%s423_s30] sm:$0xff]  ;;  %1653 = vmatpush3.bf16.msra.mxu1 %v1833_v9  ;;  %s1563_s13 = sshll.u32 %s2216_s12, 5  ;;  %s1614_s15 = sshll.u32 %s1999_s20, 9 }
  0x34   : > { %v433_v1 = vsel %vm432_vm0, %v2164_v0, 0.0  ;;  %1658 = vmatprep.subr.bf16.mxu1 %v2012_v8  ;;  %v1565_v14 = vld [vmem:[%s2446_s1] ss:$0 sm:$0xff]  ;;  %s2219_s21 = scalar_lea.vmem [#allocation9], %s1563_s13 }
  0x35   : > { %434 = vadd.xlane.f32.xlu0 %v433_v1  ;;  %v1566_v16 = vld [vmem:[%s2447_s2] ss:$0 sm:$0xff]  ;;  %s1434_s30 = sshll.u32 %s2219_s21, 4  ;;  %s2334_s30 = int_to_ptr.vmem [resolvable:$true] %s1434_s30 }
  0x36   : > { %v653_v9 = vld [vmem:[%s2425_s4] sm:$0xf] }
  0xbe   : > { %v435_v2 = vpop.xlane.xlu0 %434 }
  0xbf   : > { %v437_v3 = vmul.f32 0.03125, %v435_v2 }
  0xc1   : > { %v438_v4 = vsub.f32 %v2164_v0, %v437_v3 }
  0xc3   : > { %v439_v5 = vmul.f32 %v438_v4, %v438_v4 }
  0xc5   : > { %v440_v6 = vsel %vm432_vm0, %v439_v5, 0.0 }
  0xc6   : > { %441 = vadd.xlane.f32.xlu0 %v440_v6 }
 0x14f   : > { %v442_v10 = vpop.xlane.xlu0 %441 }
 0x150   : > { %v443_v11 = vmul.f32 0.03125, %v442_v10 }
 0x152   : > { %v444_v12 = vadd.f32 1e-05, %v443_v11 }
 0x154   : > { %1849 = vrsqrt.f32 %v444_v12  ;;  %v830_v12 = vsel %vm608_vm4, %v653_v9, 0 }
 0x161   : > { %v1850_v13 = vpop.eup %1849 }
 0x162   : > { %v446_v15 = vmul.f32 %v1850_v13, %v438_v4  ;;  %v779_v4 = vld [vmem:[%s2425_s4 + $0x4] sm:$0xf] }
 0x163   : > { %v784_v5 = vsel %vm608_vm4, %v779_v4, 0 }
 0x164   : > { %v453_v17 = vmul.f32 %v1565_v14, %v446_v15 }
 0x166   : > { %v460_v18 = vadd.f32 %v1566_v16, %v453_v17 }
 0x168   : > { %v461_v19 = vpack.c.bf16 %v460_v18, %v460_v18 }
 0x16a   : > { %1655 = vmatmul.mubr.msk.bf16.vlgmr.msra.gmra.mxu1 %vm432_vm0, %v461_v19 }
 0x16b   : > { %1660 = vmatprep.mubr.msk.bf16.mxu1 %vm2013_vm1, %v2012_v8 }
 0x22a   : > { %v515_v20 = vpop.f32.mrf.mxu1 }
 0x22b   : > { %v521_v21 = vpack.c.bf16 %v515_v20, %v515_v20 }
 0x22c   : > { %v1656_v22 = vpop.f32.mrf.mxu1 }
 0x22d   : > { %523 = vst.msk [vmem:[#allocation2] sm:$0xf] %vm522_vm2, %v521_v21  ;;  %527 = vrot.lane.b32.xlu1 %v521_v21, %s2014_s26  ;;  %s2339_s26 = scalar_lea.hbm %s2432_s11, %s1614_s15 }
 0x22e   : > { %v518_v23 = vpop.f32.mrf.mxu1 }
 0x230   : > { %v1657_v24 = vpop.f32.mrf.mxu1 }
 0x234   : > { %v1834_v25 = vld [vmem:[#allocation2] ss:$0 sps:$4 sm:$0xff]  }
 0x235   : > { %660 = vrot.lane.b32.xlu0 %v1834_v25, %s2015_s28  ;;  %v542_v30 = vld [vmem:[#allocation2] sm:$0xf] }
 0x236   : > { %v1838_v54 = vld [vmem:[#allocation2] ss:$0 sps:$4 sm:$0xff]  }
 0x29f   : > { %v528_v26 = vpop.permute.xlu1 %527 }
 0x2a0   : > { %530 = vst.msk [vmem:[#allocation3] sm:$0xf] %vm522_vm2, %v528_v26 }
 0x2a7   : > { %v543_v27 = vld [vmem:[#allocation3] sm:$0xf]  ;;  %v661_v33 = vpop.permute.xlu0 %660 }
 0x2a8   : > { %v1835_v28 = vld [vmem:[#allocation3] ss:$0 sps:$4 sm:$0xff]   ;;  %v550_v29 = vsel %vm545_vm3, %v543_v27, 0 }
 0x2a9   : > { %1659 = vmatpush3.bf16.xpose.msra.mxu1 %v550_v29  ;;  %665 = vrot.lane.b32.xlu1 %v1835_v28, %s2015_s28  ;;  %v1837_v53 = vld [vmem:[#allocation3] ss:$0 sps:$4 sm:$0xff]  }
 0x2aa   : > { %1670 = vmatprep.subr.bf16.mxu1 %v2012_v8 }
 0x2b0   : > { %1661 = vmatmul.mubr.msk.bf16.vlgmr.msra.gmra.mxu1 %vm545_vm3, %v542_v30 }
 0x2b1   : > { %1672 = vmatprep.mubr.msk.bf16.mxu1 %vm2013_vm1, %v2012_v8 }
 0x31b   : > { %v666_v31 = vpop.permute.xlu1 %665 }
 0x31c   : > { %v671_v32 = vsel %vm545_vm3, %v666_v31, 0 }
 0x31d   : > { %1671 = vmatpush3.bf16.xpose.msra.mxu1 %v671_v32 }
 0x31e   : > { %1682 = vmatprep.subr.bf16.mxu1 %v2012_v8 }
 0x324   : > { %1673 = vmatmul.mubr.msk.bf16.vlgmr.msra.gmra.mxu1 %vm545_vm3, %v661_v33 }
 0x325   : > { %1684 = vmatprep.mubr.msk.bf16.mxu1 %vm2013_vm1, %v2012_v8  ;;  %1683 = vmatpush3.bf16.msra.mxu1 %v784_v5 }
 0x326   : > { %1694 = vmatprep.subr.bf16.mxu1 %v2012_v8 }
 0x370   : > { %v586_v34 = vpop.f32.mrf.mxu1 }
 0x371   : > { %v592_v35 = vsel %vm545_vm3, %v586_v34, -inf }
 0x372   : > { %593 = vmax.xlane.f32.xlu1 %v592_v35  ;;  %v1662_v36 = vpop.f32.mrf.mxu1 }
 0x374   : > { %v589_v37 = vpop.f32.mrf.mxu1 }
 0x376   : > { %v1663_v38 = vpop.f32.mrf.mxu1 }
 0x383   : > { %531 = vrot.lane.b32.xlu1 %v521_v21, %s2016_s14  ;;  %s1897_s14 = scalar_lea.vmem %s2334_s30, 512 }
 0x384   : > { %p1898_p10 = scmp.ne.s32.totalorder %s2334_s30, %s1897_s14 }
 0x386   : > { %p1899_p11 = pnand %p1898_p10, %p2123_p4 }
 0x388   : > { %p1900_p13 = pneg %p1899_p11 }
 0x3e4   : > { %v707_v39 = vpop.f32.mrf.mxu1 }
 0x3e5   : > { %v713_v40 = vsel %vm545_vm3, %v707_v39, -inf }
 0x3e6   : > { %714 = vmax.xlane.f32.xlu0 %v713_v40  ;;  %v1674_v41 = vpop.f32.mrf.mxu1 }
 0x3e8   : > { %v710_v42 = vpop.f32.mrf.mxu1 }
 0x3ea   : > { %v1675_v43 = vpop.f32.mrf.mxu1 }
 0x3fb   : > { %v594_v44 = vpop.xlane.xlu1 %593 }
 0x3fc   : > { %v595_v45 = vsub.f32 %v586_v34, %v594_v44 }
 0x3fe   : > { %v596_v46 = vmul.f32 1.442695, %v595_v45 }
 0x3ff   : > { %v532_v47 = vpop.permute.xlu1 %531 }
 0x400   : > { %1851 = vpow2.f32 %v596_v46  ;;  %534 = vst.msk [vmem:[#allocation4] sm:$0xf] %vm522_vm2, %v532_v47  ;;  %v1840_v46 = vld [vmem:[#allocation3] ss:$0 sps:$4 sm:$0xff]   ;;  %v1841_v47 = vld [vmem:[#allocation2] ss:$0 sps:$4 sm:$0xff]  }
 0x407   : > { %v544_v48 = vld [vmem:[#allocation4] sm:$0xf] }
 0x408   : > { %v610_v49 = vsel %vm608_vm4, %v544_v48, 0  ;;  %v1836_v52 = vld [vmem:[#allocation4] ss:$0 sps:$4 sm:$0xff]  }
 0x409   : > { %1665 = vmatpush3.bf16.msra.mxu0 %v610_v49  ;;  %v1839_v60 = vld [vmem:[#allocation4] ss:$0 sps:$4 sm:$0xff]  }
 0x40a   : > { %1676 = vmatprep.subr.bf16.mxu0 %v2012_v8  ;;  %v1842_v4 = vld [vmem:[#allocation4] ss:$0 sps:$4 sm:$0xff]  }
 0x40d   : > { %v1852_v50 = vpop.eup %1851 }
 0x40e   : > { %v598_v51 = vsel %vm545_vm3, %v1852_v50, 0.0 }
 0x40f   : > { %599 = vadd.xlane.f32.xlu0 %v598_v51 }
 0x425   : > { %730 = vrot.lane.b32.xlu0 %v1836_v52, %s2015_s28 }
 0x429   : > { %883 = vrot.lane.b32.xlu0 %v1837_v53, %s2017_s16 }
 0x42d   : > { %878 = vrot.lane.b32.xlu0 %v1838_v54, %s2017_s16 }
 0x46f   : > { %v715_v55 = vpop.xlane.xlu0 %714 }
 0x470   : > { %v716_v56 = vsub.f32 %v707_v39, %v715_v55  ;;  %v997_v55 = vld [vmem:[%s2425_s4 + $0x8] sm:$0xf] }
 0x472   : > { %v717_v57 = vmul.f32 1.442695, %v716_v56  ;;  %v1002_v56 = vsel %vm608_vm4, %v997_v55, 0  ;;  %v1596_v55 = vld [vmem:[%s2428_s7] ss:$0 sm:$0xff] }
 0x474   : > { %1853 = vpow2.f32 %v717_v57 }
 0x481   : > { %v1854_v58 = vpop.eup %1853 }
 0x482   : > { %v719_v59 = vsel %vm545_vm3, %v1854_v58, 0.0 }
 0x483   : > { %720 = vadd.xlane.f32.xlu1 %v719_v59 }
 0x494   : > { %948 = vrot.lane.b32.xlu1 %v1839_v60, %s2017_s16  ;;  %s2019_s16 = smov [#allocation9]  }
 0x495   : > { %s1901_s13 = sshll.u32 %s2019_s16, 4  ;;  %s1902_s13 = int_to_ptr.vmem [resolvable:$false] %s1901_s13 }
 0x496   : > { %p1904_p0 = scmp.lt.s32.totalorder %s2334_s30, %s1902_s13 }
 0x498   : > { %v600_v61 = vpop.xlane.xlu0 %599 }
 0x499   : > { %1855 = vrcp.f32 %v600_v61 }
 0x49c   : > { %v731_v1 = vpop.permute.xlu0 %730 }
 0x49d   : > { %v736_v3 = vsel %vm608_vm4, %v731_v1, 0 }
 0x4a0   : > { %v884_v20 = vpop.permute.xlu0 %883 }
 0x4a1   : > { %v889_v24 = vsel %vm545_vm3, %v884_v20, 0 }
 0x4a4   : > { %v879_v27 = vpop.permute.xlu0 %878 }
 0x4a6   : > { %v1856_v62 = vpop.eup %1855 }
 0x4a7   : > { %v602_v63 = vmul.f32 %v1856_v62, %v1852_v50 }
 0x4a9   : > { %v604_v2 = vpack.c.bf16 %v602_v63, %v602_v63  ;;  %603 = vst.msk [vmem:[%s2219_s21] sm:$0xff] %vm545_vm3, %v602_v63 }
 0x4ab   : > { %1667 = vmatmul.mubr.msk.bf16.vlgmr.msra.gmra.mxu0 %vm545_vm3, %v604_v2 }
 0x4ac   : > { %1677 = vmatpush3.bf16.msra.mxu0 %v736_v3  ;;  %1678 = vmatprep.mubr.msk.bf16.mxu0 %vm2013_vm1, %v2012_v8 }
 0x4ad   : > { %1688 = vmatprep.subr.bf16.mxu0 %v2012_v8 }
 0x50c   : > { %v721_v6 = vpop.xlane.xlu1 %720 }
 0x50d   : > { %1857 = vrcp.f32 %v721_v6 }
 0x510   : > { %v949_v13 = vpop.permute.xlu1 %948 }
 0x511   : > { %v954_v17 = vsel %vm608_vm4, %v949_v13, 0 }
 0x51a   : > { %v1858_v7 = vpop.eup %1857 }
 0x51b   : > { %v723_v10 = vmul.f32 %v1858_v7, %v1854_v58 }
 0x51d   : > { %v726_v11 = vpack.c.bf16 %v723_v10, %v723_v10  ;;  %1576 = vst.msk [vmem:[%s2219_s21 + $0x8] sm:$0xff] %vm545_vm3, %v723_v10 }
 0x51f   : > { %1679 = vmatmul.mubr.msk.bf16.vlgmr.msra.gmra.mxu0 %vm545_vm3, %v726_v11 }
 0x520   : > { %1689 = vmatpush3.bf16.msra.mxu0 %v830_v12  ;;  %1690 = vmatprep.mubr.msk.bf16.mxu0 %vm2013_vm1, %v2012_v8 }
 0x521   : > { %1700 = vmatprep.subr.bf16.mxu0 %v2012_v8 }
 0x56b   : > { %v646_v14 = vpop.f32.mrf.mxu0 }
 0x56c   : > { %v652_v15 = vpack.c.bf16 %v646_v14, %v646_v14 }
 0x56d   : > { %v1668_v16 = vpop.f32.mrf.mxu0 }
 0x56e   : > { %1691 = vmatmul.mubr.msk.bf16.vlgmr.msra.gmra.mxu0 %vm545_vm3, %v652_v15  ;;  %v1170_v15 = vld [vmem:[%s2425_s4 + $0xc] sm:$0xf] }
 0x56f   : > { %1701 = vmatpush3.bf16.msra.mxu0 %v954_v17  ;;  %v649_v18 = vpop.f32.mrf.mxu0  ;;  %1702 = vmatprep.mubr.msk.bf16.mxu0 %vm2013_vm1, %v2012_v8  ;;  %v1175_v17 = vsel %vm608_vm4, %v1170_v15, 0 }
 0x570   : > { %1712 = vmatprep.subr.bf16.mxu0 %v2012_v8 }
 0x571   : > { %v1669_v19 = vpop.f32.mrf.mxu0 }
 0x5df   : > { %v772_v21 = vpop.f32.mrf.mxu0 }
 0x5e0   : > { %v778_v22 = vpack.c.bf16 %v772_v21, %v772_v21 }
 0x5e1   : > { %v1680_v23 = vpop.f32.mrf.mxu0 }
 0x5e2   : > { %1685 = vmatmul.mubr.msk.bf16.vlgmr.msra.gmra.mxu1 %vm545_vm3, %v778_v22 }
 0x5e3   : > { %1695 = vmatpush3.bf16.xpose.msra.mxu1 %v889_v24  ;;  %v775_v25 = vpop.f32.mrf.mxu0  ;;  %1696 = vmatprep.mubr.msk.bf16.mxu1 %vm2013_vm1, %v2012_v8 }
 0x5e4   : > { %1706 = vmatprep.subr.bf16.mxu1 %v2012_v8 }
 0x5e5   : > { %v1681_v26 = vpop.f32.mrf.mxu0 }
 0x5ea   : > { %1697 = vmatmul.mubr.msk.bf16.vlgmr.msra.gmra.mxu1 %vm545_vm3, %v879_v27 }
 0x5eb   : > { %1708 = vmatprep.mubr.msk.bf16.mxu1 %vm2013_vm1, %v2012_v8  ;;  %1707 = vmatpush3.bf16.msra.mxu1 %v1002_v56 }
 0x5ec   : > { %1718 = vmatprep.subr.bf16.mxu1 %v2012_v8 }
 0x62e   : > { %v2256_v28 = vpop.f32.mrf.mxu0 }
 0x630   : > { %v1692_v29 = vpop.f32.mrf.mxu0 }
 0x632   : > { %v869_v30 = vpop.f32.mrf.mxu0 }
 0x634   : > { %v1693_v31 = vpop.f32.mrf.mxu0 }
 0x6a2   : > { %v2258_v32 = vpop.f32.mrf.mxu1 }
 0x6a3   : > { %v867_v13 = vadd.f32 %v2256_v28, %v2258_v32  ;;  %v1595_v32 = vld [vmem:[%s2426_s5] ss:$0 sm:$0xff] }
 0x6a4   : > { %v1686_v33 = vpop.f32.mrf.mxu1 }
 0x6a6   : > { %v823_v34 = vpop.f32.mrf.mxu1 }
 0x6a8   : > { %v1687_v35 = vpop.f32.mrf.mxu1 }
 0x6aa   : > { %v925_v36 = vpop.f32.mrf.mxu1 }
 0x6ab   : > { %v931_v37 = vsel %vm545_vm3, %v925_v36, -inf }
 0x6ac   : > { %932 = vmax.xlane.f32.xlu0 %v931_v37  ;;  %v1698_v38 = vpop.f32.mrf.mxu1 }
 0x6ae   : > { %v928_v39 = vpop.f32.mrf.mxu1 }
 0x6b0   : > { %v1699_v40 = vpop.f32.mrf.mxu1 }
 0x735   : > { %v933_v41 = vpop.xlane.xlu0 %932 }
 0x736   : > { %v934_v42 = vsub.f32 %v925_v36, %v933_v41 }
 0x738   : > { %v935_v43 = vmul.f32 1.442695, %v934_v42 }
 0x73a   : > { %1859 = vpow2.f32 %v935_v43 }
 0x747   : > { %v1860_v44 = vpop.eup %1859 }
 0x748   : > { %v937_v45 = vsel %vm545_vm3, %v1860_v44, 0.0 }
 0x749   : > { %938 = vadd.xlane.f32.xlu1 %v937_v45  ;;  %v1844_v45 = vld [vmem:[#allocation5] sm:$0xff]  }
 0x75a   : > { %1056 = vrot.lane.b32.xlu1 %v1840_v46, %s2018_s24 }
 0x75e   : > { %1051 = vrot.lane.b32.xlu1 %v1841_v47, %s2018_s24 }
 0x7d2   : > { %v939_v48 = vpop.xlane.xlu1 %938 }
 0x7d3   : > { %1861 = vrcp.f32 %v939_v48 }
 0x7d6   : > { %v1057_v51 = vpop.permute.xlu1 %1056 }
 0x7d7   : > { %v1062_v53 = vsel %vm545_vm3, %v1057_v51, 0  ;;  %v1845_v51 = vld [vmem:[%s2429_s8 + $0x18] sm:$0xff]  }
 0x7da   : > { %v1052_v54 = vpop.permute.xlu1 %1051 }
 0x7e0   : > { %v1862_v49 = vpop.eup %1861 }
 0x7e1   : > { %v941_v50 = vmul.f32 %v1862_v49, %v1860_v44  ;;  %v1843_v44 = vld [vmem:[#allocation5 + $0x8] sm:$0xff]  }
 0x7e3   : > { %v944_v52 = vpack.c.bf16 %v941_v50, %v941_v50  ;;  %1584 = vst.msk [vmem:[%s2219_s21 + $0x10] sm:$0xff] %vm545_vm3, %v941_v50 }
 0x7e5   : > { %1703 = vmatmul.mubr.msk.bf16.vlgmr.msra.gmra.mxu0 %vm545_vm3, %v944_v52  ;;  %v1846_v52 = vld [vmem:[%s2429_s8 + $0x10] sm:$0xff]  }
 0x7e6   : > { %1713 = vmatpush3.bf16.xpose.msra.mxu0 %v1062_v53  ;;  %1714 = vmatprep.mubr.msk.bf16.mxu0 %vm2013_vm1, %v2012_v8  ;;  %v1847_v53 = vld [vmem:[%s2429_s8 + $0x8] sm:$0xff]  }
 0x7e7   : > { %1724 = vmatprep.subr.bf16.mxu0 %v2012_v8 }
 0x7ed   : > { %1715 = vmatmul.mubr.msk.bf16.vlgmr.msra.gmra.mxu0 %vm545_vm3, %v1052_v54  ;;  %v1848_v54 = vld [vmem:[%s2429_s8] sm:$0xff]  }
 0x7ee   : > { %1726 = vmatprep.mubr.msk.bf16.mxu0 %vm2013_vm1, %v2012_v8  ;;  %1725 = vmatpush3.bf16.msra.mxu0 %v1175_v17 }
 0x7ef   : > { %1738 = vmatprep.subr.bf16.mxu0 %v2012_v8 }
 0x8a5   : > { %v990_v57 = vpop.f32.mrf.mxu0 }
 0x8a6   : > { %v996_v58 = vpack.c.bf16 %v990_v57, %v990_v57 }
 0x8a7   : > { %v1704_v59 = vpop.f32.mrf.mxu0 }
 0x8a8   : > { %1709 = vmatmul.mubr.msk.bf16.vlgmr.msra.gmra.mxu1 %vm545_vm3, %v996_v58 }
 0x8a9   : > { %v993_v60 = vpop.f32.mrf.mxu0  ;;  %1720 = vmatprep.mubr.msk.bf16.mxu1 %vm2013_vm1, %v2012_v8 }
 0x8ab   : > { %v1705_v61 = vpop.f32.mrf.mxu0 }
 0x8ad   : > { %v1098_v62 = vpop.f32.mrf.mxu0 }
 0x8ae   : > { %v1104_v63 = vsel %vm545_vm3, %v1098_v62, -inf }
 0x8af   : > { %1105 = vmax.xlane.f32.xlu0 %v1104_v63  ;;  %v1716_v1 = vpop.f32.mrf.mxu0 }
 0x8b1   : > { %v1101_v2 = vpop.f32.mrf.mxu0 }
 0x8b3   : > { %v1717_v3 = vpop.f32.mrf.mxu0 }
 0x8c5   : > { %1121 = vrot.lane.b32.xlu0 %v1842_v4, %s2018_s24 }
 0x938   : > { %v1106_v5 = vpop.xlane.xlu0 %1105 }
 0x939   : > { %v1107_v6 = vsub.f32 %v1098_v62, %v1106_v5 }
 0x93b   : > { %v1108_v7 = vmul.f32 1.442695, %v1107_v6 }
 0x93c   : > { %v1122_v9 = vpop.permute.xlu0 %1121 }
 0x93d   : > { %1863 = vpow2.f32 %v1108_v7  ;;  %v1127_v10 = vsel %vm608_vm4, %v1122_v9, 0 }
 0x93e   : > { %1719 = vmatpush3.bf16.msra.mxu1 %v1127_v10 }
 0x93f   : > { %1730 = vmatprep.subr.bf16.mxu1 %v2012_v8 }
 0x94a   : > { %v1864_v11 = vpop.eup %1863 }
 0x94b   : > { %v1110_v12 = vsel %vm545_vm3, %v1864_v11, 0.0 }
 0x94c   : > { %1111 = vadd.xlane.f32.xlu1 %v1110_v12 }
 0x968   : > { %v1038_v14 = vpop.f32.mrf.mxu1 }
 0x969   : > { %v1044_v16 = vadd.f32 %v1038_v14, %v867_v13 }
 0x96a   : > { %v1710_v18 = vpop.f32.mrf.mxu1 }
 0x96c   : > { %v1041_v19 = vpop.f32.mrf.mxu1 }
 0x96e   : > { %v1711_v20 = vpop.f32.mrf.mxu1 }
 0x9d5   : > { %v1112_v21 = vpop.xlane.xlu1 %1111 }
 0x9d6   : > { %1865 = vrcp.f32 %v1112_v21 }
 0x9e3   : > { %v1866_v22 = vpop.eup %1865 }
 0x9e4   : > { %v1114_v23 = vmul.f32 %v1866_v22, %v1864_v11 }
 0x9e6   : > { %v1117_v24 = vpack.c.bf16 %v1114_v23, %v1114_v23  ;;  %1591 = vst.msk [vmem:[%s2219_s21 + $0x18] sm:$0xff] %vm545_vm3, %v1114_v23  ;;  %s1903_s21 = scalar_lea.vmem %s1902_s13, 1024 }
 0x9e7   : > { %p1905_p1 = scmp.lt.s32.totalorder %s1903_s21, %s1897_s14 }
 0x9e8   : > { %1721 = vmatmul.mubr.msk.bf16.vlgmr.msra.gmra.mxu1 %vm545_vm3, %v1117_v24 }
 0x9e9   : > { %1734 = vmatprep.mubr.msk.bf16.mxu1 %vm2013_vm1, %v2012_v8  ;;  %1731 = vmatpush3.bf16.msra.mxu1 %v1843_v44  ;;  %p1906_p2 = por %p1905_p1, %p1904_p0 }
 0x9ea   : > { %1732 = vmatprep.subr.bf16.mxu1 %v2012_v8 }
 0x9eb   : > { %p1907_p3 = pnand %p1906_p2, %p1900_p13 }
 0x9ed   : > { %1733 = vmatpush3.bf16.msra.mxu1 %v1844_v45 }
 0xaa8   : > { %v1163_v25 = vpop.f32.mrf.mxu1 }
 0xaa9   : > { %v1169_v26 = vpack.c.bf16 %v1163_v25, %v1163_v25 }
 0xaaa   : > { %v1722_v27 = vpop.f32.mrf.mxu1 }
 0xaab   : > { %1727 = vmatmul.mubr.msk.bf16.vlgmr.msra.gmra.mxu0 %vm545_vm3, %v1169_v26 }
 0xaac   : > { %v1166_v28 = vpop.f32.mrf.mxu1  ;;  %1746 = vmatprep.mubr.msk.bf16.mxu0 %vm2013_vm1, %v2012_v8  ;;  %1739 = vmatpush3.bf16.msra.mxu0 %v1845_v51 }
 0xaad   : > { %1740 = vmatprep.subr.bf16.mxu0 %v2012_v8 }
 0xaae   : > { %v1723_v29 = vpop.f32.mrf.mxu1 }
 0xab0   : > { %1741 = vmatpush3.bf16.msra.mxu0 %v1846_v52 }
 0xab1   : > { %1742 = vmatprep.subr.bf16.mxu0 %v2012_v8 }
 0xab4   : > { %1743 = vmatpush3.bf16.msra.mxu0 %v1847_v53 }
 0xab5   : > { %1744 = vmatprep.subr.bf16.mxu0 %v2012_v8 }
 0xab8   : > { %1745 = vmatpush3.bf16.msra.mxu0 %v1848_v54 }
 0xb6b   : > { %v1211_v30 = vpop.f32.mrf.mxu0 }
 0xb6c   : > { %v1217_v31 = vadd.f32 %v1211_v30, %v1044_v16 }
 0xb6d   : > { %v1728_v33 = vpop.f32.mrf.mxu0 }
 0xb6e   : > { %v1218_v34 = vadd.f32 %v1217_v31, %v2164_v0 }
 0xb6f   : > { %v1214_v35 = vpop.f32.mrf.mxu0 }
 0xb70   : > { %v2306_v36 = vadd.f32 %v1595_v32, %v1218_v34 }
 0xb71   : > { %v1729_v37 = vpop.f32.mrf.mxu0 }
 0xb72   : > { %v1228_v38 = vsel %vm432_vm0, %v2306_v36, 0.0 }
 0xb73   : > { %1229 = vadd.xlane.f32.xlu0 %v1228_v38 }
 0xbfc   : > { %v1230_v39 = vpop.xlane.xlu0 %1229 }
 0xbfd   : > { %v1232_v40 = vmul.f32 0.03125, %v1230_v39 }
 0xbff   : > { %v1233_v41 = vsub.f32 %v2306_v36, %v1232_v40 }
 0xc01   : > { %v1234_v42 = vmul.f32 %v1233_v41, %v1233_v41 }
 0xc03   : > { %v1235_v43 = vsel %vm432_vm0, %v1234_v42, 0.0 }
 0xc04   : > { %1236 = vadd.xlane.f32.xlu1 %v1235_v43 }
 0xc8d   : > { %v1237_v0 = vpop.xlane.xlu1 %1236 }
 0xc8e   : > { %v1238_v46 = vmul.f32 0.03125, %v1237_v0 }
 0xc90   : > { %v1239_v47 = vadd.f32 1e-05, %v1238_v46 }
 0xc92   : > { %1867 = vrsqrt.f32 %v1239_v47 }
 0xc9f   : > { %v1868_v48 = vpop.eup %1867 }
 0xca0   : > { %v1241_v49 = vmul.f32 %v1868_v48, %v1233_v41 }
 0xca2   : > { %v1242_v50 = vpack.c.bf16 %v1241_v49, %v1241_v49 }
 0xca4   : > { %1735 = vmatmul.mubr.msk.bf16.vlgmr.msra.gmra.mxu1 %vm432_vm0, %v1242_v50 }
 0xd64   : > { %v1303_v56 = vpop.f32.mrf.mxu1 }
 0xd65   : > { %v1304_v57 = vadd.f32 %v1596_v55, %v1303_v56 }
 0xd66   : > { %v1736_v58 = vpop.f32.mrf.mxu1 }
 0xd67   : > { %v1310_v59 = vmul.f32 0.70710677, %v1304_v57  ;;  %v1309_v62 = vmul.f32 0.5, %v1304_v57 }
 0xd68   : > { %v1306_v60 = vpop.f32.mrf.mxu1 }
 0xd69   : > { %1869 = verf.f32 %v1310_v59 }
 0xd6a   : > { %v1737_v8 = vpop.f32.mrf.mxu1 }
 0xd76   : > { %v1870_v61 = vpop.eup %1869 }
 0xd77   : > { %v1312_v63 = vadd.f32 1.0, %v1870_v61 }
 0xd79   : > { %v1313_v1 = vmul.f32 %v1312_v63, %v1309_v62 }
 0xd7b   : > { %v1314_v2 = vpack.c.bf16 %v1313_v1, %v1313_v1 }
 0xd7d   : > { %1747 = vmatmul.mubr.msk.bf16.vlgmr.msra.gmra.mxu0 %vm1354_vm5, %v1314_v2 }
 0xd7e   : > { %1910 = shalt.err (!%p1907_p3)
}
 0xd7f   : > { %s1911_s25 = scalar_lea.hbm %s2339_s26, 512  ;;  %s1915_s24 = scalar_lea.hbm %s2432_s11, 1024 }
 0xd80   : > { %p1912_p5 = scmp.ne.s32.totalorder %s2339_s26, %s1911_s25  ;;  %p1916_p9 = scmp.lt.s32.totalorder %s2339_s26, %s2432_s11 }
 0xd81   : > { %p1917_p12 = scmp.lt.s32.totalorder %s1915_s24, %s1911_s25 }
 0xd82   : > { %p1913_p6 = pnand %p1912_p5, %p2123_p4 }
 0xd83   : > { %p1918_p10 = por %p1917_p12, %p1916_p9 }
 0xd84   : > { %p1914_p7 = pneg %p1913_p6 }
 0xd86   : > { %p1919_p11 = pnand %p1918_p10, %p1914_p7 }
 0xd88   : > { %1922 = shalt.err (!%p1919_p11)
}
 0xd89   : > { %s2020_s14 = smov 128   ;;  %s2021_s13 = smov 8   ;;  %v1600_v3 = vld [vmem:[%s2430_s9] ss:$0 sm:$0xff] }
 0xd8a   : > { %s2448_s21 = scalar_lea.sflag [#allocation10], %s2216_s12  ;;  %s1562_s15 = sshll.u32 %s2216_s12, 3 }
 0xd8b   : > { %1755 = dma.vmem_to_hbm [thread:$0]  (%p2123_p4), %s2334_s30, 512, %s2339_s26, %s2448_s21, %s2020_s14, %s2020_s14, %s2021_s13  }
 0xd8c   : > { %s1608_s25 = sshll.u32 %s1999_s20, 7  ;;  %s412_s24 = scalar_lea.vmem [#allocation8], %s1562_s15 }
 0xd8d   : > { %s1420_s16 = sshll.u32 %s412_s24, 4  ;;  %s2373_s2 = scalar_lea.hbm %s2431_s10, %s1608_s25  ;;  %s2375_s16 = int_to_ptr.vmem [resolvable:$true] %s1420_s16 }
 0xd8e   : > { %s1401_s20 = scalar_lea.sflag [#allocation7], %s2216_s12  ;;  %s1923_s30 = scalar_lea.vmem %s2375_s16, 128 }
 0xd8f   : > { %p1924_p13 = scmp.ne.s32.totalorder %s2375_s16, %s1923_s30  ;;  %s2022_s26 = smov [#allocation8]  }
 0xd90   : > { %s1927_s14 = sshll.u32 %s2022_s26, 4  ;;  %s1928_s14 = int_to_ptr.vmem [resolvable:$false] %s1927_s14 }
 0xd91   : > { %p1925_p0 = pnand %p1924_p13, %p2123_p4  ;;  %s1929_s0 = scalar_lea.vmem %s1928_s14, 256 }
 0xd92   : > { %p1930_p2 = scmp.lt.s32.totalorder %s2375_s16, %s1928_s14  ;;  %p1931_p3 = scmp.lt.s32.totalorder %s1929_s0, %s1923_s30 }
 0xd93   : > { %p1926_p1 = pneg %p1925_p0 }
 0xd94   : > { %p1932_p5 = por %p1931_p3, %p1930_p2 }
 0xd96   : > { %p1933_p6 = pnand %p1932_p5, %p1926_p1 }
 0xe3d   : > { %v1392_v4 = vpop.f32.mrf.mxu0 }
 0xe3e   : > { %v1393_v5 = vadd.f32 %v1600_v3, %v1392_v4 }
 0xe3f   : > { %v1748_v6 = vpop.f32.mrf.mxu0 }
 0xe40   : > { %v1398_v7 = vadd.f32 %v1393_v5, %v2306_v36 }
 0xe41   : > { %v1395_v9 = vpop.f32.mrf.mxu0 }
 0xe42   : > { %1399 = vst.msk [vmem:[%s412_s24] sm:$0xff] %vm432_vm0, %v1398_v7 }
 0xe43   : > { %v1749_v10 = vpop.f32.mrf.mxu0 }
 0xe44   : > { %1936 = shalt.err (!%p1933_p6)
}
 0xe45   : > { %s1937_s1 = scalar_lea.hbm %s2373_s2, 128  ;;  %s1941_s21 = scalar_lea.hbm %s2431_s10, 256 }
 0xe46   : > { %p1938_p7 = scmp.ne.s32.totalorder %s2373_s2, %s1937_s1  ;;  %p1942_p10 = scmp.lt.s32.totalorder %s2373_s2, %s2431_s10 }
 0xe47   : > { %p1943_p11 = scmp.lt.s32.totalorder %s1941_s21, %s1937_s1 }
 0xe48   : > { %p1939_p9 = pnand %p1938_p7, %p2123_p4 }
 0xe49   : > { %p1944_p13 = por %p1943_p11, %p1942_p10 }
 0xe4a   : > { %p1940_p12 = pneg %p1939_p9 }
 0xe4c   : > { %p1945_p0 = pnand %p1944_p13, %p1940_p12 }
 0xe4e   : > { %1948 = shalt.err (!%p1945_p0)
}
 0xe4f   : > { %1754 = dma.vmem_to_hbm [thread:$0]  (%p2123_p4), %s2375_s16, 128, %s2373_s2, %s1401_s20  }
 0xe50 PF: > { %p1771_p1 = scmp.ge.s32.totalorder %s2007_s22, 2  ;;  %s1449_s28 = sand.u32 1, %s1987_s17  }
 0xe51   : > { %s1450_s25 = scalar_lea.sflag [#allocation7], %s1449_s28 }
 0xe52   : > { %p1763_p2 = pnand %p1771_p1, %p2130_p8 }
 0xe54   : > { %p1764_p3 = pneg %p1763_p2 }
 0xe56   : > { %1978 = dma.done.wait (%p1764_p3), %s1450_s25, 128  }
 0xe57   : > { %1980 = vsyncadd (%p1764_p3), %s1450_s25, 4294967168  ;;  %s1459_s24 = scalar_lea.sflag [#allocation10], %s1449_s28 }
 0xe58   : > { %1982 = dma.done.wait (%p1764_p3), %s1459_s24, 512  }
 0xe59   : > { %1984 = vsyncadd (%p1764_p3), %s1459_s24, 4294966784  ;;  %s29_s22 = sadd.s32 1, %s2007_s22   ;;  %s2449_s2 = sld [smem:[#allocation16_spill]] }
 0xe5a   : > { %p26_p5 = scmp.ge.s32.totalorder %s29_s22, 4   ;;  %s2450_s20 = sld [smem:[#allocation14_spill]] }
 0xe5b   : > { %s2451_s21 = sld [smem:[#allocation15_spill]]  ;;  %s2452_s17 = smov %s1991_s18 }
 0xe5c   : > { %s2453_s18 = smov %s1995_s19  ;;  %28 = sbr.rel (!%p26_p5) target bundleno = 11 (0xb), region = 126 }
 0xe5f   : > { %s2454_s19 = smov %s2449_s2 }
 0xe61   :  { %1464 = vsyncpa [#allocation6], 1 }
 0xe62   :  { %1466 = vsyncpa [#allocation6 + $0x1], 1 }
 0xe63   :  { %1467 = vsyncpa [#allocation7], 1 }
 0xe64   :  { %1469 = vsyncpa [#allocation7 + $0x1], 1 }
 0xe65   :  { %1470 = vsyncpa [#allocation10], 1 }
 0xe66   :  { %1472 = vsyncpa [#allocation10 + $0x1], 1 }

</bundles_post_ra>
